<compile_context>
chip_gen: v7x
topology: tpu7x:2x2x1
jax: 0.10.0
libtpu: 0.0.40
codegen_flags: <defaults>
</compile_context>

<pallas_src>
import functools

import jax
import jax.numpy as jnp
from jax import lax
from jax.experimental import pallas as pl
from jax.experimental.pallas import tpu as pltpu

NEG_SLOPE = 0.01  # torch.nn.LeakyReLU default

# 3x3 tap offsets, row-major over (kh, kw): t = (dy+1)*3 + (dx+1)
_TAPS = tuple((dy, dx) for dy in (-1, 0, 1) for dx in (-1, 0, 1))


def _leaky_relu(x):
    return jnp.where(x > 0, x, NEG_SLOPE * x)


def _gan_kernel(x_ref, m_ref, w1_ref, b1_ref, w2_ref, b2_ref, o_ref, *, W):
    """One grid step = B packed images, BL = B*H*W lanes.

    x_ref : (8, BL)    sublanes = [x1 c0..c2 | x2 c0..c2 | zero-pad | zero-pad]
    m_ref : (9, BL)    per-tap halo masks (1.0 inside the image, 0.0 on the halo)
    w1_ref: (CH, 72)   stacked-tap conv1 weights, col = 8*tap + cin (cin 6,7 are zero)
    b1_ref: (CH, 1)
    w2_ref: (CO, 9*CH) stacked-tap conv2 weights, col = CH*tap + cin
    b2_ref: (CO, 1)
    o_ref : (CO, BL)
    """
    f32 = jnp.float32
    BL = x_ref.shape[-1]

    # Mask rows loaded once, reused by both convs (center tap needs no mask).
    mask_rows = [m_ref[t:t + 1, :] for t in range(9)]

    def taps(a):
        # tap t: out[:, i] = a[:, i + dy*W + dx], zeroed on the halo.  With images
        # packed along the lane axis, roll wraparound across image boundaries lands
        # exactly on halo positions, which the masks zero -> semantics preserved.
        cols = []
        for t, (dy, dx) in enumerate(_TAPS):
            s = dy * W + dx
            if s == 0:
                v = a                                   # center tap: no roll, no mask
            else:
                v = pltpu.roll(a, shift=(-s) % BL, axis=1)
                v = v * mask_rows[t]
            cols.append(v)
        return jnp.concatenate(cols, axis=0)            # 8-aligned sublane blocks

    # ---- conv1 (6 -> CH, 3x3, pad 1) as one stacked contraction + LeakyReLU --------
    a1 = taps(x_ref[...])                                           # (72, BL)
    h = jnp.dot(w1_ref[...], a1, preferred_element_type=f32)        # (CH, BL)
    h = _leaky_relu(h + b1_ref[...])

    # ---- conv2 (CH -> CO, 3x3, pad 1) as one stacked contraction + LeakyReLU + Tanh -
    a2 = taps(h)                                                    # (9*CH, BL)
    y = jnp.dot(w2_ref[...], a2, preferred_element_type=f32)        # (CO, BL)
    y = jnp.tanh(_leaky_relu(y + b2_ref[...]))

    o_ref[...] = y.astype(o_ref.dtype)


def _halo_masks(H, W, B):
    """(9, B*H*W) f32 masks, 1.0 where tap (dy,dx) stays inside its image."""
    L = H * W
    lane = jnp.arange(L, dtype=jnp.int32)
    row = lane // W
    col = lane % W
    rows = []
    for dy, dx in _TAPS:
        m = jnp.ones((L,), jnp.bool_)
        if dy > 0:
            m = m & (row < (H - dy))
        if dy < 0:
            m = m & (row >= -dy)
        if dx > 0:
            m = m & (col < (W - dx))
        if dx < 0:
            m = m & (col >= -dx)
        rows.append(m)
    mask = jnp.stack(rows, axis=0).astype(jnp.float32)              # (9, L)
    return jnp.tile(mask, (1, B))                                   # (9, B*L)


def _images_per_step(N, L, max_lanes=4096):
    """Largest divisor B of N with >=2 grid blocks (when N>=2) and B*L <= max_lanes."""
    best = 1
    for b in range(1, N + 1):
        if N % b:
            continue
        if N >= 2 and (N // b) < 2:
            continue   # keep >=2 parallel blocks so both v7x TensorCores get work
        if b * L > max_lanes:
            continue   # keep per-step working set small (fits every generation's VMEM)
        best = b
    return best


def gan_generator_forward(x1, x2, params):
    """x1, x2: (N, 3, H, W) float32 (NCHW, as the PyTorch module expects).

    Returns (N, 3, H, W) float32.
    """
    w1, b1, w2, b2 = params              # torch layouts: (O, I, 3, 3) and (O,)
    N, c1, H, W = x1.shape
    c2 = x2.shape[1]
    L = H * W
    CH = w1.shape[0]
    CO = w2.shape[0]
    cin = c1 + c2                        # 6
    cin_pad = 8                          # pad to a full sublane group

    # Pack activations once: channels on sublanes (padded 6 -> 8), flattened
    # image-major spatial on the lane axis.  torch.cat(dim=1) is fused here.
    x = jnp.concatenate(
        [x1.reshape(N, c1, L), x2.reshape(N, c2, L),
         jnp.zeros((N, cin_pad - cin, L), x1.dtype)], axis=1)       # (N, 8, L)
    xp = jnp.transpose(x, (1, 0, 2)).reshape(cin_pad, N * L)        # (8, N*L)

    # Stacked-tap weight matrices matching the sublane order of the stacked taps.
    w1s = jnp.transpose(w1, (2, 3, 1, 0)).reshape(9, cin, CH)       # (tap, cin, CH)
    w1s = jnp.pad(w1s, ((0, 0), (0, cin_pad - cin), (0, 0)))        # (9, 8, CH)
    w1s = w1s.reshape(9 * cin_pad, CH).T                            # (CH, 72)
    w2s = jnp.transpose(w2, (2, 3, 1, 0)).reshape(9 * CH, CO).T     # (CO, 9*CH)
    b1c = b1.reshape(CH, 1)
    b2c = b2.reshape(CO, 1)

    B = _images_per_step(N, L)
    G = N // B
    BL = B * L
    masks = _halo_masks(H, W, B)                                    # (9, BL)

    kernel = functools.partial(_gan_kernel, W=W)
    const = dict(pipeline_mode=pl.Buffered(1))   # DMA'd once; single buffer suffices

    out = pl.pallas_call(
        kernel,
        out_shape=jax.ShapeDtypeStruct((CO, N * L), jnp.float32),
        grid_spec=pltpu.PrefetchScalarGridSpec(
            num_scalar_prefetch=0,
            grid=(G,),
            in_specs=[
                pl.BlockSpec((cin_pad, BL), lambda g: (0, g)),
                pl.BlockSpec((9, BL), lambda g: (0, 0), **const),
                pl.BlockSpec((CH, 9 * cin_pad), lambda g: (0, 0), **const),
                pl.BlockSpec((CH, 1), lambda g: (0, 0), **const),
                pl.BlockSpec((CO, 9 * CH), lambda g: (0, 0), **const),
                pl.BlockSpec((CO, 1), lambda g: (0, 0), **const),
            ],
            out_specs=pl.BlockSpec((CO, BL), lambda g: (0, g)),
        ),
        compiler_params=pltpu.CompilerParams(
            dimension_semantics=("parallel",)),
    )(xp, masks, w1s, b1c, w2s, b2c)

    # Free/cheap un-pack back to NCHW.
    return jnp.transpose(out.reshape(CO, N, L), (1, 0, 2)).reshape(N, CO, H, W)


def init_params(key, channels=16):
    """Deterministic synthetic weights in PyTorch (OIHW / O) layouts."""
    k1, k2, k3, k4 = jax.random.split(key, 4)
    bound1 = float(1.0 / (6 * 3 * 3) ** 0.5)
    bound2 = float(1.0 / (channels * 3 * 3) ** 0.5)
    w1 = jax.random.uniform(k1, (channels, 6, 3, 3), jnp.float32, -bound1, bound1)
    b1 = jax.random.uniform(k2, (channels,), jnp.float32, -bound1, bound1)
    w2 = jax.random.uniform(k3, (3, channels, 3, 3), jnp.float32, -bound2, bound2)
    b2 = jax.random.uniform(k4, (3,), jnp.float32, -bound2, bound2)
    return w1, b1, w2, b2


def _reference(x1, x2, params):
    """Pure-JAX NCHW reference matching the PyTorch forward."""
    w1, b1, w2, b2 = params
    x = jnp.concatenate([x1, x2], axis=1)
    dn = ("NCHW", "OIHW", "NCHW")
    h = lax.conv_general_dilated(x, w1, (1, 1), "SAME", dimension_numbers=dn)
    h = _leaky_relu(h + b1.reshape(1, -1, 1, 1))
    y = lax.conv_general_dilated(h, w2, (1, 1), "SAME", dimension_numbers=dn)
    y = _leaky_relu(y + b2.reshape(1, -1, 1, 1))
    return jnp.tanh(y)


if __name__ == "__main__":
    key = jax.random.PRNGKey(0)
    kx1, kx2, kp = jax.random.split(key, 3)

    N, H, W = 2, 16, 16
    # Two 3-channel NCHW inputs, exactly as the PyTorch module consumes them.
    x1 = jax.random.normal(kx1, (N, 3, H, W), jnp.float32)
    x2 = jax.random.normal(kx2, (N, 3, H, W), jnp.float32)
    params = init_params(kp, channels=16)

    out = gan_generator_forward(x1, x2, params)
    out = jax.block_until_ready(out)

    ref = _reference(x1, x2, params)
    assert out.shape == (N, 3, H, W)
    assert jnp.allclose(out, ref, rtol=1e-4, atol=1e-4), "mismatch vs reference"

    print("KERNEL_OK")
</pallas_src>

<mosaic_0001>
module attributes {stable_mosaic.version = 11 : i64} {
  func.func @_gan_kernel(%arg0: i32, %arg1: memref<8x256xf32, #tpu.memory_space<vmem>>, %arg2: memref<9x256xf32, #tpu.memory_space<vmem>>, %arg3: memref<16x72xf32, #tpu.memory_space<vmem>>, %arg4: memref<16x1xf32, #tpu.memory_space<vmem>>, %arg5: memref<3x144xf32, #tpu.memory_space<vmem>>, %arg6: memref<3x1xf32, #tpu.memory_space<vmem>>, %arg7: memref<3x256xf32, #tpu.memory_space<vmem>>) attributes {dimension_semantics = [#tpu.dimension_semantics<parallel>], iteration_bounds = array<i64: 2>, scalar_prefetch = 0 : i64, scratch_operands = 0 : i64, tpu.core_type = #tpu.core_type<tc>, window_params = [{transform_indices = @transform_0, window_bounds = array<i64: 8, 256>}, {pipeline_mode = #tpu.pipeline_mode<synchronous>, transform_indices = @transform_1, window_bounds = array<i64: 9, 256>}, {pipeline_mode = #tpu.pipeline_mode<synchronous>, transform_indices = @transform_2, window_bounds = array<i64: 16, 72>}, {pipeline_mode = #tpu.pipeline_mode<synchronous>, transform_indices = @transform_3, window_bounds = array<i64: 16, 1>}, {pipeline_mode = #tpu.pipeline_mode<synchronous>, transform_indices = @transform_4, window_bounds = array<i64: 3, 144>}, {pipeline_mode = #tpu.pipeline_mode<synchronous>, transform_indices = @transform_5, window_bounds = array<i64: 3, 1>}, {transform_indices = @transform_6, window_bounds = array<i64: 3, 256>}]} {
    %c0 = arith.constant 0 : index
    %c0_0 = arith.constant 0 : index
    %0 = vector.load %arg2[%c0, %c0_0] : memref<9x256xf32, #tpu.memory_space<vmem>>, vector<1x256xf32>
    %c1 = arith.constant 1 : index
    %c0_1 = arith.constant 0 : index
    %1 = vector.load %arg2[%c1, %c0_1] : memref<9x256xf32, #tpu.memory_space<vmem>>, vector<1x256xf32>
    %c2 = arith.constant 2 : index
    %c0_2 = arith.constant 0 : index
    %2 = vector.load %arg2[%c2, %c0_2] : memref<9x256xf32, #tpu.memory_space<vmem>>, vector<1x256xf32>
    %c3 = arith.constant 3 : index
    %c0_3 = arith.constant 0 : index
    %3 = vector.load %arg2[%c3, %c0_3] : memref<9x256xf32, #tpu.memory_space<vmem>>, vector<1x256xf32>
    %c5 = arith.constant 5 : index
    %c0_4 = arith.constant 0 : index
    %4 = vector.load %arg2[%c5, %c0_4] : memref<9x256xf32, #tpu.memory_space<vmem>>, vector<1x256xf32>
    %c6 = arith.constant 6 : index
    %c0_5 = arith.constant 0 : index
    %5 = vector.load %arg2[%c6, %c0_5] : memref<9x256xf32, #tpu.memory_space<vmem>>, vector<1x256xf32>
    %c7 = arith.constant 7 : index
    %c0_6 = arith.constant 0 : index
    %6 = vector.load %arg2[%c7, %c0_6] : memref<9x256xf32, #tpu.memory_space<vmem>>, vector<1x256xf32>
    %c8 = arith.constant 8 : index
    %c0_7 = arith.constant 0 : index
    %7 = vector.load %arg2[%c8, %c0_7] : memref<9x256xf32, #tpu.memory_space<vmem>>, vector<1x256xf32>
    %c0_8 = arith.constant 0 : index
    %c0_9 = arith.constant 0 : index
    %8 = vector.load %arg1[%c0_8, %c0_9] : memref<8x256xf32, #tpu.memory_space<vmem>>, vector<8x256xf32>
    %c17_i32 = arith.constant 17 : i32
    %9 = tpu.dynamic_rotate %8 by %c17_i32 dim 1 : vector<8x256xf32>, i32 -> vector<8x256xf32>
    %10 = vector.broadcast %0 : vector<1x256xf32> to vector<8x256xf32>
    %11 = arith.mulf %9, %10 : vector<8x256xf32>
    %c16_i32 = arith.constant 16 : i32
    %12 = tpu.dynamic_rotate %8 by %c16_i32 dim 1 : vector<8x256xf32>, i32 -> vector<8x256xf32>
    %13 = vector.broadcast %1 : vector<1x256xf32> to vector<8x256xf32>
    %14 = arith.mulf %12, %13 : vector<8x256xf32>
    %c15_i32 = arith.constant 15 : i32
    %15 = tpu.dynamic_rotate %8 by %c15_i32 dim 1 : vector<8x256xf32>, i32 -> vector<8x256xf32>
    %16 = vector.broadcast %2 : vector<1x256xf32> to vector<8x256xf32>
    %17 = arith.mulf %15, %16 : vector<8x256xf32>
    %c1_i32 = arith.constant 1 : i32
    %18 = tpu.dynamic_rotate %8 by %c1_i32 dim 1 : vector<8x256xf32>, i32 -> vector<8x256xf32>
    %19 = vector.broadcast %3 : vector<1x256xf32> to vector<8x256xf32>
    %20 = arith.mulf %18, %19 : vector<8x256xf32>
    %c255_i32 = arith.constant 255 : i32
    %21 = tpu.dynamic_rotate %8 by %c255_i32 dim 1 : vector<8x256xf32>, i32 -> vector<8x256xf32>
    %22 = vector.broadcast %4 : vector<1x256xf32> to vector<8x256xf32>
    %23 = arith.mulf %21, %22 : vector<8x256xf32>
    %c241_i32 = arith.constant 241 : i32
    %24 = tpu.dynamic_rotate %8 by %c241_i32 dim 1 : vector<8x256xf32>, i32 -> vector<8x256xf32>
    %25 = vector.broadcast %5 : vector<1x256xf32> to vector<8x256xf32>
    %26 = arith.mulf %24, %25 : vector<8x256xf32>
    %c240_i32 = arith.constant 240 : i32
    %27 = tpu.dynamic_rotate %8 by %c240_i32 dim 1 : vector<8x256xf32>, i32 -> vector<8x256xf32>
    %28 = vector.broadcast %6 : vector<1x256xf32> to vector<8x256xf32>
    %29 = arith.mulf %27, %28 : vector<8x256xf32>
    %c239_i32 = arith.constant 239 : i32
    %30 = tpu.dynamic_rotate %8 by %c239_i32 dim 1 : vector<8x256xf32>, i32 -> vector<8x256xf32>
    %31 = vector.broadcast %7 : vector<1x256xf32> to vector<8x256xf32>
    %32 = arith.mulf %30, %31 : vector<8x256xf32>
    %33 = tpu.concatenate %11, %14, %17, %20, %8, %23, %26, %29, %32 in 0 : vector<8x256xf32>, vector<8x256xf32>, vector<8x256xf32>, vector<8x256xf32>, vector<8x256xf32>, vector<8x256xf32>, vector<8x256xf32>, vector<8x256xf32>, vector<8x256xf32> -> vector<72x256xf32>
    %c0_10 = arith.constant 0 : index
    %c0_11 = arith.constant 0 : index
    %34 = vector.load %arg3[%c0_10, %c0_11] : memref<16x72xf32, #tpu.memory_space<vmem>>, vector<16x72xf32>
    %cst = arith.constant dense<0.000000e+00> : vector<16x256xf32>
    %35 = tpu.matmul %34, %33, %cst {dimension_numbers = #tpu.dot_dimension_numbers<[1], [0], [0], [1], [0, 0, 1, 1], [], []>} : vector<16x72xf32>, vector<72x256xf32>, vector<16x256xf32> -> vector<16x256xf32>
    %c0_12 = arith.constant 0 : index
    %c0_13 = arith.constant 0 : index
    %36 = vector.load %arg4[%c0_12, %c0_13] : memref<16x1xf32, #tpu.memory_space<vmem>>, vector<16x1xf32>
    %37 = vector.broadcast %36 : vector<16x1xf32> to vector<16x256xf32>
    %38 = arith.addf %35, %37 : vector<16x256xf32>
    %cst_14 = arith.constant 0.000000e+00 : f32
    %39 = vector.broadcast %cst_14 : f32 to vector<16x256xf32>
    %40 = arith.cmpf ogt, %38, %39 : vector<16x256xf32>
    %cst_15 = arith.constant 0.00999999977 : f32
    %41 = vector.broadcast %cst_15 : f32 to vector<16x256xf32>
    %42 = arith.mulf %41, %38 : vector<16x256xf32>
    %43 = arith.select %40, %38, %42 : vector<16x256xi1>, vector<16x256xf32>
    %c17_i32_16 = arith.constant 17 : i32
    %44 = tpu.dynamic_rotate %43 by %c17_i32_16 dim 1 : vector<16x256xf32>, i32 -> vector<16x256xf32>
    %45 = vector.broadcast %0 : vector<1x256xf32> to vector<16x256xf32>
    %46 = arith.mulf %44, %45 : vector<16x256xf32>
    %c16_i32_17 = arith.constant 16 : i32
    %47 = tpu.dynamic_rotate %43 by %c16_i32_17 dim 1 : vector<16x256xf32>, i32 -> vector<16x256xf32>
    %48 = vector.broadcast %1 : vector<1x256xf32> to vector<16x256xf32>
    %49 = arith.mulf %47, %48 : vector<16x256xf32>
    %c15_i32_18 = arith.constant 15 : i32
    %50 = tpu.dynamic_rotate %43 by %c15_i32_18 dim 1 : vector<16x256xf32>, i32 -> vector<16x256xf32>
    %51 = vector.broadcast %2 : vector<1x256xf32> to vector<16x256xf32>
    %52 = arith.mulf %50, %51 : vector<16x256xf32>
    %c1_i32_19 = arith.constant 1 : i32
    %53 = tpu.dynamic_rotate %43 by %c1_i32_19 dim 1 : vector<16x256xf32>, i32 -> vector<16x256xf32>
    %54 = vector.broadcast %3 : vector<1x256xf32> to vector<16x256xf32>
    %55 = arith.mulf %53, %54 : vector<16x256xf32>
    %c255_i32_20 = arith.constant 255 : i32
    %56 = tpu.dynamic_rotate %43 by %c255_i32_20 dim 1 : vector<16x256xf32>, i32 -> vector<16x256xf32>
    %57 = vector.broadcast %4 : vector<1x256xf32> to vector<16x256xf32>
    %58 = arith.mulf %56, %57 : vector<16x256xf32>
    %c241_i32_21 = arith.constant 241 : i32
    %59 = tpu.dynamic_rotate %43 by %c241_i32_21 dim 1 : vector<16x256xf32>, i32 -> vector<16x256xf32>
    %60 = vector.broadcast %5 : vector<1x256xf32> to vector<16x256xf32>
    %61 = arith.mulf %59, %60 : vector<16x256xf32>
    %c240_i32_22 = arith.constant 240 : i32
    %62 = tpu.dynamic_rotate %43 by %c240_i32_22 dim 1 : vector<16x256xf32>, i32 -> vector<16x256xf32>
    %63 = vector.broadcast %6 : vector<1x256xf32> to vector<16x256xf32>
    %64 = arith.mulf %62, %63 : vector<16x256xf32>
    %c239_i32_23 = arith.constant 239 : i32
    %65 = tpu.dynamic_rotate %43 by %c239_i32_23 dim 1 : vector<16x256xf32>, i32 -> vector<16x256xf32>
    %66 = vector.broadcast %7 : vector<1x256xf32> to vector<16x256xf32>
    %67 = arith.mulf %65, %66 : vector<16x256xf32>
    %68 = tpu.concatenate %46, %49, %52, %55, %43, %58, %61, %64, %67 in 0 : vector<16x256xf32>, vector<16x256xf32>, vector<16x256xf32>, vector<16x256xf32>, vector<16x256xf32>, vector<16x256xf32>, vector<16x256xf32>, vector<16x256xf32>, vector<16x256xf32> -> vector<144x256xf32>
    %c0_24 = arith.constant 0 : index
    %c0_25 = arith.constant 0 : index
    %69 = vector.load %arg5[%c0_24, %c0_25] : memref<3x144xf32, #tpu.memory_space<vmem>>, vector<3x144xf32>
    %cst_26 = arith.constant dense<0.000000e+00> : vector<3x256xf32>
    %70 = tpu.matmul %69, %68, %cst_26 {dimension_numbers = #tpu.dot_dimension_numbers<[1], [0], [0], [1], [0, 0, 1, 1], [], []>} : vector<3x144xf32>, vector<144x256xf32>, vector<3x256xf32> -> vector<3x256xf32>
    %c0_27 = arith.constant 0 : index
    %c0_28 = arith.constant 0 : index
    %71 = vector.load %arg6[%c0_27, %c0_28] : memref<3x1xf32, #tpu.memory_space<vmem>>, vector<3x1xf32>
    %72 = vector.broadcast %71 : vector<3x1xf32> to vector<3x256xf32>
    %73 = arith.addf %70, %72 : vector<3x256xf32>
    %cst_29 = arith.constant 0.000000e+00 : f32
    %74 = vector.broadcast %cst_29 : f32 to vector<3x256xf32>
    %75 = arith.cmpf ogt, %73, %74 : vector<3x256xf32>
    %cst_30 = arith.constant 0.00999999977 : f32
    %76 = vector.broadcast %cst_30 : f32 to vector<3x256xf32>
    %77 = arith.mulf %76, %73 : vector<3x256xf32>
    %78 = arith.select %75, %73, %77 : vector<3x256xi1>, vector<3x256xf32>
    %79 = math.tanh %78 : vector<3x256xf32>
    %c0_31 = arith.constant 0 : index
    %c0_32 = arith.constant 0 : index
    %80 = vector.load %arg7[%c0_31, %c0_32] : memref<3x256xf32, #tpu.memory_space<vmem>>, vector<3x256xf32>
    tpu.vector_store %arg7[%c0_31, %c0_32], %79 {strides = array<i32>} : memref<3x256xf32, #tpu.memory_space<vmem>>, vector<3x256xf32>,
    return
  }
  func.func @transform_0(%arg0: i32) -> (i32, i32) {
    %c0_i32 = arith.constant 0 : i32
    %c0_i32_0 = arith.constant 0 : i32
    return %c0_i32, %arg0 : i32, i32
  }
  func.func @transform_1(%arg0: i32) -> (i32, i32) {
    %c0_i32 = arith.constant 0 : i32
    %c0_i32_0 = arith.constant 0 : i32
    %c0_i32_1 = arith.constant 0 : i32
    return %c0_i32, %c0_i32_0 : i32, i32
  }
  func.func @transform_2(%arg0: i32) -> (i32, i32) {
    %c0_i32 = arith.constant 0 : i32
    %c0_i32_0 = arith.constant 0 : i32
    %c0_i32_1 = arith.constant 0 : i32
    return %c0_i32, %c0_i32_0 : i32, i32
  }
  func.func @transform_3(%arg0: i32) -> (i32, i32) {
    %c0_i32 = arith.constant 0 : i32
    %c0_i32_0 = arith.constant 0 : i32
    %c0_i32_1 = arith.constant 0 : i32
    return %c0_i32, %c0_i32_0 : i32, i32
  }
  func.func @transform_4(%arg0: i32) -> (i32, i32) {
    %c0_i32 = arith.constant 0 : i32
    %c0_i32_0 = arith.constant 0 : i32
    %c0_i32_1 = arith.constant 0 : i32
    return %c0_i32, %c0_i32_0 : i32, i32
  }
  func.func @transform_5(%arg0: i32) -> (i32, i32) {
    %c0_i32 = arith.constant 0 : i32
    %c0_i32_0 = arith.constant 0 : i32
    %c0_i32_1 = arith.constant 0 : i32
    return %c0_i32, %c0_i32_0 : i32, i32
  }
  func.func @transform_6(%arg0: i32) -> (i32, i32) {
    %c0_i32 = arith.constant 0 : i32
    %c0_i32_0 = arith.constant 0 : i32
    return %c0_i32, %arg0 : i32, i32
  }
}

</mosaic_0001>

<bundles_post_ra>
// kernel: tpu_custom_call.1
= control target key start
LH: loop header
LB: loop body
LE: loop exit
PB: predicated region body
PF: predicated region fallthrough
CT: control target
= control target key end

     0   :  { %11 = vsyncpa [#allocation3], 0  ;;  %s1794_s0 = inlined_call_operand.hbm [shape: f32[8,512], index: 0, kind: input, shape index: {}]   ;;  %s1795_s1 = inlined_call_operand.hbm [shape: f32[9,256], index: 1, kind: input, shape index: {}]   ;;  %s1796_s2 = inlined_call_operand.vmem [shape: f32[16,72], index: 2, kind: input, shape index: {}]   ;;  %s1797_s3 = inlined_call_operand.vmem [shape: f32[16,1], index: 3, kind: input, shape index: {}]   ;;  %s1798_s4 = inlined_call_operand.vmem [shape: f32[3,144], index: 4, kind: input, shape index: {}]   ;;  %s1799_s5 = inlined_call_operand.vmem [shape: f32[3,1], index: 5, kind: input, shape index: {}]   ;;  %s1800_s6 = inlined_call_operand.hbm [shape: f32[3,512], index: 6, kind: output, shape index: {}]  }
   0x1   :  { %13 = vsyncpa [#allocation3 + $0x1], 0 }
   0x2   :  { %14 = vsyncpa [#allocation6], 0 }
   0x3   :  { %15 = vsyncpa [#allocation4], 0 }
   0x4   :  { %17 = vsyncpa [#allocation4 + $0x1], 0  ;;  %s1222_s21 = smov 0   ;;  %s1224_s22 = smov 0  }
   0x5   :  { %s1226_s23 = smov 0   ;;  %s1228_s24 = smov 0  }
   0x6 LB: > { %s1243_s25 = sadd.s32 4294967295, %s1170_s24   ;;  %s893_s26 = sadd.s32 4294967294, %s1170_s24   ;;  %s1170_s24 = sphi %s1228_s24, %s1820_s24   ;;  %s1166_s23 = sphi %s1226_s23, %s1819_s23   ;;  %s1162_s22 = sphi %s1224_s22, %s1818_s22   ;;  %s1158_s21 = sphi %s1222_s21, %s1817_s21  }
   0x7   : > { %p43_p0 = scmp.ne.s32.totalorder %s1162_s22, %s1158_s21  ;;  %p1801_p1 = scmp.eq.s32.totalorder %s1243_s25, 0 }
   0x8   : > { %p178_p3 = scmp.eq.s32.totalorder %s893_s26, 1  ;;  %p894_p5 = scmp.ge.s32.totalorder %s1170_s24, 1 }
   0x9   : > { %p1252_p4 = por %p1801_p1, %p43_p0  ;;  %p185_p7 = scmp.lt.s32.totalorder %s1170_s24, 3 }
   0xa   : > { %p1257_p6 = por %p178_p3, %p43_p0  ;;  %s1172_s30 = smov [#allocation5]  }
   0xb   : > { %s1804_s27 = scalar_select %p1252_p4, 1, 0 }
   0xc   : > { %s1805_s28 = scalar_select %p1257_p6, 1, 0 }
   0xd   : > { %p1262_p8 = pnand %p894_p5, %p185_p7  ;;  %s197_s7 = sshll.u32 %s1172_s30, 4  ;;  %s1266_s7 = int_to_ptr.vmem [resolvable:$true] %s197_s7 }
   0xe   : > { %s1278_s9 = sadd.s32 1, %s1170_s24   ;;  %s30_s10 = sadd.s32 1, %s1166_s23 }
   0xf   : > { %s1806_s29 = scalar_select %p1262_p8, 1, 0 }
  0x10   : > { %p974_p9 = pneg %p1262_p8  ;;  %s27_s11 = ssub.s32 %s1170_s24, %s1278_s9 }
  0x11   : > { %s1042_s14 = scalar_lea.hbm %s1795_s1, 512 }
  0x12   : > { %p1273_p11 = pnand %p974_p9, %p1801_p1  ;;  %p1043_p12 = scmp.ne.s32.totalorder %s1795_s1, %s1042_s14 }
  0x13   : > { %p1049_p5 = scmp.lt.u32.totalorder %s1042_s14, %s1795_s1 }
  0x14   : > { %p1044_p13 = pneg %p1273_p11 }
  0x16   : > { %p1045_p0 = pnand %p1044_p13, %p1043_p12 }
  0x18   : > { %p1046_p3 = pneg %p1045_p0 }
  0x1a   : > { %p1051_p7 = pnand %p1049_p5, %p1046_p3 }
  0x1c   : > { %1054 = shalt.err (!%p1051_p7)
}
  0x1d   : > { %s1055_s19 = scalar_lea.vmem %s1266_s7, 512  ;;  %p1063_p2 = scmp.lt.s32.totalorder %s1266_s7, %s1266_s7 }
  0x1e   : > { %p1056_p9 = scmp.ne.s32.totalorder %s1266_s7, %s1055_s19  ;;  %p1064_p6 = scmp.lt.s32.totalorder %s1055_s19, %s1055_s19 }
  0x20   : > { %p1058_p10 = pnand %p1056_p9, %p1044_p13  ;;  %p1065_p4 = por %p1064_p6, %p1063_p2 }
  0x22   : > { %p1059_p1 = pneg %p1058_p10 }
  0x24   : > { %p1066_p8 = pnand %p1065_p4, %p1059_p1 }
  0x26   : > { %1069 = shalt.err (!%p1066_p8)
}
  0x27   : > { %s1173_s20 = smov 256   ;;  %s1174_s26 = smov 16  }
  0x28   : > { %977 = dma.hbm_to_vmem [thread:$0]  (!%p1273_p11), %s1795_s1, 512, %s1266_s7, [#allocation6], %s1173_s20, %s1173_s20, %s1174_s26  }
  0x29   : > { %p28_p2 = scmp.eq.s32.totalorder %s27_s11, 0  ;;  %p37_p1 = scmp.ne.s32.totalorder %s1166_s23, %s1162_s22 }
  0x2a   : > { %p38_p4 = scmp.eq.s32.totalorder %s1170_s24, 0  ;;  %p987_p6 = scmp.lt.s32.totalorder %s1170_s24, 2 }
  0x2b   : > { %s1309_s13 = scalar_select %p28_p2, %s1166_s23, %s30_s10  }
  0x2c   : > { %p39_p8 = por %p38_p4, %p37_p1  ;;  %p1808_p10 = scmp.eq.s32.totalorder %s1243_s25, 1 }
  0x2d   : > { %s223_s15 = sand.u32 1, %s1166_s23   ;;  %s912_s16 = sshll.u32 %s1170_s24, 8 }
  0x2e   : > { %p1313_p12 = por %p1808_p10, %p37_p1  ;;  %s897_s17 = sshll.u32 %s223_s15, 4 }
  0x2f   : > { %s1322_s19 = scalar_lea.hbm %s1794_s0, %s912_s16  ;;  %s227_s7 = scalar_lea.vmem [#allocation2], %s897_s17 }
  0x30   : > { %s235_s10 = sshll.u32 %s227_s7, 4  ;;  %p1324_p11 = pnand %p987_p6, %p39_p8  ;;  %s1328_s10 = int_to_ptr.vmem [resolvable:$true] %s235_s10 }
  0x31   : > { %s224_s20 = scalar_lea.sflag [#allocation3], %s223_s15  ;;  %s1070_s26 = scalar_lea.hbm %s1322_s19, 256 }
  0x32   : > { %p1071_p13 = scmp.ne.s32.totalorder %s1322_s19, %s1070_s26  ;;  %p1072_p0 = pneg %p1324_p11 }
  0x33   : > { %s1075_s16 = scalar_lea.hbm %s1794_s0, 512  ;;  %p1076_p7 = scmp.lt.u32.totalorder %s1322_s19, %s1794_s0 }
  0x34   : > { %p1073_p3 = pnand %p1072_p0, %p1071_p13  ;;  %p1077_p9 = scmp.lt.u32.totalorder %s1075_s16, %s1070_s26 }
  0x35   : > { %p1079_p1 = scmp.lt.u32.totalorder %s1070_s26, %s1322_s19 }
  0x36   : > { %p1074_p5 = pneg %p1073_p3  ;;  %p1078_p2 = por %p1077_p9, %p1076_p7 }
  0x38   : > { %p1080_p4 = por %p1079_p1, %p1078_p2 }
  0x3a   : > { %p1081_p6 = pnand %p1080_p4, %p1074_p5 }
  0x3c   : > { %1084 = shalt.err (!%p1081_p6)
}
  0x3d   : > { %s1085_s15 = scalar_lea.vmem %s1328_s10, 256  ;;  %s1175_s18 = smov [#allocation2]  }
  0x3e   : > { %p1086_p8 = scmp.ne.s32.totalorder %s1328_s10, %s1085_s15  ;;  %s1090_s7 = sshll.u32 %s1175_s18, 4  ;;  %s1091_s7 = int_to_ptr.vmem [resolvable:$false] %s1090_s7 }
  0x3f   : > { %s1092_s30 = scalar_lea.vmem %s1091_s7, 512  ;;  %p1093_p3 = scmp.lt.s32.totalorder %s1328_s10, %s1091_s7 }
  0x40   : > { %p1088_p10 = pnand %p1086_p8, %p1072_p0  ;;  %p1094_p7 = scmp.lt.s32.totalorder %s1092_s30, %s1085_s15 }
  0x42   : > { %p1089_p13 = pneg %p1088_p10  ;;  %p1095_p9 = por %p1094_p7, %p1093_p3 }
  0x44   : > { %p1096_p2 = pnand %p1095_p9, %p1089_p13 }
  0x46   : > { %1099 = shalt.err (!%p1096_p2)
}
  0x47   : > { %981 = dma.hbm_to_vmem [thread:$0]  (!%p1324_p11), %s1322_s19, 256, %s1328_s10, %s224_s20  }
  0x48   : > { %p1811_p5 = scmp.ne.s32.totalorder %s1806_s29, 0 }
  0x49   : > { %s1358_s26 = sand.u32 (!%p1811_p5), 1, %s1162_s22   ;;  %p1812_p0 = scmp.ne.s32.totalorder (!%p1811_p5), %s1804_s27, 0 }
  0x4a   : > { %244 = sbr.rel (%p1811_p5) target bundleno = 886 (0x376), region = 44  ;;  %s901_s12 = sshll.u32 (!%p1811_p5), %s1358_s26, 4 }
  0x4b   : > { %s247_s16 = scalar_lea.sflag (!%p1811_p5), [#allocation3], %s1358_s26  ;;  %s250_s17 = scalar_lea.vmem (!%p1811_p5), [#allocation2], %s901_s12 }
  0x51   : > { %1145 = dma.done.wait (%p1812_p0), %s247_s16, 256  }
  0x52   : > { %1147 = vsyncadd (%p1812_p0), %s247_s16, 4294967040  ;;  %p1813_p1 = scmp.eq.s32.totalorder %s1243_s25, 0 }
  0x54   : > { %1149 = dma.done.wait (%p1813_p1), [#allocation6], 512   ;;  %p1814_p11 = pmov %p1813_p1 }
  0x55   : > { %v1370_v0 = vld [vmem:[%s250_s17] sm:$0xff]  ;;  %s1176_s29 = smov 16   ;;  %s1177_s19 = smov 17   ;;  %v1376_v1 = vld [vmem:[%s250_s17 + $0x8] sm:$0xff]  ;;  %v1182_v2 = vmov 0.0   ;;  %v1184_v3 = vmov 0   ;;  %v306_v6 = vlaneseq }
  0x56   : > { %1151 = vsyncadd (%p1814_p11), [#allocation6], 4294966784  ;;  %324 = vrot.lane.b32.xlu1 %v1370_v0, %s1176_s29  ;;  %302 = vrot.lane.b32.xlu0 %v1370_v0, %s1177_s19  ;;  %s1178_s27 = smov 15   ;;  %s1179_s10 = smov 1   ;;  %v466_v4 = vld [vmem:[%s1797_s3] sm:$0xff]  ;;  %v467_v5 = vld [vmem:[%s1797_s3 + $0x8] sm:$0xff] }
  0x57   : > { %s1180_s11 = smov 127   ;;  %s1181_s20 = smov 113   ;;  %549 = vmatprep.mubr.f32.mxu0 %v1182_v2  ;;  %1035 = vset.pattern.permute.xlu0 %v1184_v3  ;;  %v313_v7 = vshrl.u32 %v306_v6, 7  ;;  %v1413_v8 = vand.u32 127, %v306_v6  ;;  %vm478_vm8 = vcmask 588800   ;;  %vm711_vm13 = vcmask 130048  }
  0x58   : > { %s1183_s8 = smov 112   ;;  %1036 = vset.pattern.permute.xlu1 %v1184_v3  ;;  %s1185_s15 = smov 111   ;;  %v287_v11 = vld [vmem:[#allocation5 + $0x1] ss:$8 sm:$0x3] }
  0x59   : > { %v1415_v9 = vsub.s32 0, %v313_v7  ;;  %v1417_v10 = vsub.s32 1, %v313_v7  ;;  %v285_v12 = vld [vmem:[#allocation5] ss:$8 sm:$0x3]  ;;  %vm328_vm0 = vcmp.lt.s32.totalorder %v1413_v8, 16 }
  0x5a   : > { %326 = vrot.lane.b32.xlu1 %v1376_v1, %s1176_s29  ;;  %304 = vrot.lane.b32.xlu0 %v1376_v1, %s1177_s19  ;;  %vm308_vm1 = vcmp.lt.s32.totalorder %v1413_v8, 17  ;;  %v289_v29 = vld [vmem:[#allocation5 + $0x2] ss:$8 sm:$0x3]  ;;  %vm348_vm2 = vcmp.lt.s32.totalorder %v1413_v8, 15  ;;  %vm368_vm3 = vcmp.lt.s32.totalorder %v1413_v8, 1 }
  0x5b   : > { %v1422_v15 = vrot.slane %v287_v11, %v1415_v9  ;;  %v1425_v16 = vrot.slane %v285_v12, %v1415_v9  ;;  %v1428_v17 = vrot.slane %v285_v12, %v1417_v10  ;;  %v1431_v18 = vrot.slane %v287_v11, %v1417_v10  ;;  %v291_v30 = vld [vmem:[#allocation5 + $0x3] ss:$8 sm:$0x3]  ;;  %v293_v39 = vld [vmem:[#allocation5 + $0x5] ss:$8 sm:$0x3] }
  0x5c   : > { %v1448_v35 = vrot.slane %v289_v29, %v1415_v9  ;;  %v1451_v36 = vrot.slane %v289_v29, %v1417_v10  ;;  %v1454_v37 = vrot.slane %v291_v30, %v1415_v9  ;;  %v1457_v38 = vrot.slane %v291_v30, %v1417_v10  ;;  %v295_v60 = vld [vmem:[#allocation5 + $0x6] ss:$8 sm:$0x3]  ;;  %v297_v61 = vld [vmem:[#allocation5 + $0x7] ss:$8 sm:$0x3] }
  0x5d   : > { %vm388_vm4 = vcmp.lt.s32.totalorder %v1413_v8, 127  ;;  %v1469_v46 = vrot.slane %v293_v39, %v1415_v9  ;;  %v1472_v47 = vrot.slane %v293_v39, %v1417_v10  ;;  %vm408_vm5 = vcmp.lt.s32.totalorder %v1413_v8, 113  ;;  %v299_v12 = vld [vmem:[#allocation5 + $0x10] ss:$8 sm:$0x3]  ;;  %s799_s17 = scalar_lea.sflag [#allocation4], %s1358_s26 }
  0x5e   : > { %346 = vrot.lane.b32.xlu1 %v1376_v1, %s1178_s27  ;;  %344 = vrot.lane.b32.xlu0 %v1370_v0, %s1178_s27  ;;  %v1491_v6 = vrot.slane %v295_v60, %v1417_v10  ;;  %vm428_vm6 = vcmp.lt.s32.totalorder %v1413_v8, 112  ;;  %v1495_v7 = vrot.slane %v297_v61, %v1415_v9  ;;  %v1498_v11 = vrot.slane %v297_v61, %v1417_v10 }
  0x5f   : > { %vm448_vm7 = vcmp.lt.s32.totalorder %v1413_v8, 111 }
  0x62   : > { %366 = vrot.lane.b32.xlu1 %v1376_v1, %s1179_s10  ;;  %364 = vrot.lane.b32.xlu0 %v1370_v0, %s1179_s10 }
  0x66   : > { %386 = vrot.lane.b32.xlu1 %v1376_v1, %s1180_s11  ;;  %384 = vrot.lane.b32.xlu0 %v1370_v0, %s1180_s11 }
  0x6a   : > { %406 = vrot.lane.b32.xlu1 %v1376_v1, %s1181_s20  ;;  %404 = vrot.lane.b32.xlu0 %v1370_v0, %s1181_s20 }
  0x6e   : > { %426 = vrot.lane.b32.xlu1 %v1376_v1, %s1183_s8  ;;  %424 = vrot.lane.b32.xlu0 %v1370_v0, %s1183_s8 }
  0x72   : > { %446 = vrot.lane.b32.xlu1 %v1376_v1, %s1185_s15  ;;  %444 = vrot.lane.b32.xlu0 %v1370_v0, %s1185_s15 }
  0x76   : > { %470 = vperm.xlu0 %1035, %v466_v4   ;;  %475 = vperm.xlu1 %1036, %v467_v5   ;;  %v1488_v5 = vrot.slane %v295_v60, %v1415_v9  ;;  %v1605_v60 = vld [vmem:[%s1798_s4] sm:$0x77] }
  0x77   : > { %v710_v61 = vcombine.high %v1605_v60, %v1605_v60 }
  0x79   : > { %906 = vmatprep.mubr.msk.f32.mxu1 %vm711_vm13, %v710_v61 }
  0xc8   : > { %v325_v13 = vpop.permute.xlu1 %324  ;;  %v303_v14 = vpop.permute.xlu0 %302 }
  0xcc   : > { %v327_v19 = vpop.permute.xlu1 %326  ;;  %v305_v20 = vpop.permute.xlu0 %304 }
  0xcd   : > { %v329_v21 = vsel %vm328_vm0, %v325_v13, %v327_v19  ;;  %v330_v22 = vsel %vm328_vm0, %v327_v19, %v325_v13  ;;  %v309_v23 = vsel %vm308_vm1, %v303_v14, %v305_v20  ;;  %v310_v24 = vsel %vm308_vm1, %v305_v20, %v303_v14 }
  0xce   : > { %v342_v25 = vmul.f32 %v1422_v15, %v330_v22  ;;  %v322_v26 = vmul.f32 %v1425_v16, %v310_v24  ;;  %v323_v27 = vmul.f32 %v1428_v17, %v309_v23  ;;  %v343_v28 = vmul.f32 %v1431_v18, %v329_v21 }
  0xcf   : > { %v1510_v21 = vrot.slane %v299_v12, %v1417_v10 }
  0xd0   : > { %v347_v31 = vpop.permute.xlu1 %346  ;;  %v345_v32 = vpop.permute.xlu0 %344  ;;  %v914_v33 = vpack.c.bf16 %v343_v28, %v323_v27  ;;  %v916_v34 = vpack.c.bf16 %v342_v25, %v322_v26  ;;  %v1517_v26 = vrot.slane %v299_v12, %v1415_v9  ;;  %v464_v9 = vld [vmem:[%s1796_s2] sm:$0xff] }
  0xd1   : > { %v349_v40 = vsel %vm348_vm2, %v345_v32, %v347_v31  ;;  %v350_v41 = vsel %vm348_vm2, %v347_v31, %v345_v32 }
  0xd2   : > { %915 = vmatprep.subr.bf16.mxu0 %v914_v33  ;;  %v362_v48 = vmul.f32 %v1448_v35, %v350_v41  ;;  %v363_v49 = vmul.f32 %v1451_v36, %v349_v40 }
  0xd3   : > { %917 = vmatpush1.bf16.msra.mxu0 %v916_v34  ;;  %v465_v34 = vld [vmem:[%s1796_s2 + $0x8] sm:$0xff] }
  0xd4   : > { %v367_v42 = vpop.permute.xlu1 %366  ;;  %v365_v43 = vpop.permute.xlu0 %364 }
  0xd5   : > { %v369_v44 = vsel %vm368_vm3, %v365_v43, %v367_v42  ;;  %v370_v45 = vsel %vm368_vm3, %v367_v42, %v365_v43 }
  0xd6   : > { %v382_v50 = vmul.f32 %v1454_v37, %v370_v45  ;;  %v383_v51 = vmul.f32 %v1457_v38, %v369_v44 }
  0xd8   : > { %v387_v52 = vpop.permute.xlu1 %386  ;;  %v385_v53 = vpop.permute.xlu0 %384  ;;  %v918_v54 = vpack.c.bf16 %v383_v51, %v363_v49  ;;  %v920_v55 = vpack.c.bf16 %v382_v50, %v362_v48 }
  0xd9   : > { %v389_v56 = vsel %vm388_vm4, %v385_v53, %v387_v52  ;;  %v390_v57 = vsel %vm388_vm4, %v387_v52, %v385_v53 }
  0xda   : > { %v402_v58 = vmul.f32 %v1469_v46, %v389_v56  ;;  %v403_v59 = vmul.f32 %v1472_v47, %v390_v57  ;;  %919 = vmatprep.subr.bf16.mxu0 %v918_v54 }
  0xdb   : > { %921 = vmatpush1.bf16.msra.mxu0 %v920_v55 }
  0xdc   : > { %v407_v62 = vpop.permute.xlu1 %406  ;;  %v405_v63 = vpop.permute.xlu0 %404  ;;  %v922_v3 = vpack.c.bf16 %v403_v59, %v1376_v1  ;;  %v924_v4 = vpack.c.bf16 %v402_v58, %v1370_v0 }
  0xdd   : > { %v409_v1 = vsel %vm408_vm5, %v405_v63, %v407_v62  ;;  %v410_v0 = vsel %vm408_vm5, %v407_v62, %v405_v63  ;;  %v703_v62 = vld [vmem:[%s1799_s5] sm:$0x7] }
  0xde   : > { %923 = vmatprep.subr.bf16.mxu0 %v922_v3  ;;  %v422_v22 = vmul.f32 %v1488_v5, %v409_v1  ;;  %v423_v23 = vmul.f32 %v1491_v6, %v410_v0 }
  0xdf   : > { %925 = vmatpush1.bf16.msra.mxu0 %v924_v4 }
  0xe0   : > { %v427_v13 = vpop.permute.xlu1 %426  ;;  %v425_v14 = vpop.permute.xlu0 %424 }
  0xe1   : > { %v429_v19 = vsel %vm428_vm6, %v425_v14, %v427_v13  ;;  %v430_v20 = vsel %vm428_vm6, %v427_v13, %v425_v14 }
  0xe2   : > { %v442_v24 = vmul.f32 %v1495_v7, %v429_v19  ;;  %v443_v25 = vmul.f32 %v1498_v11, %v430_v20 }
  0xe4   : > { %v447_v27 = vpop.permute.xlu1 %446  ;;  %v445_v28 = vpop.permute.xlu0 %444  ;;  %v926_v29 = vpack.c.bf16 %v443_v25, %v423_v23  ;;  %v928_v30 = vpack.c.bf16 %v442_v24, %v422_v22 }
  0xe5   : > { %v449_v31 = vsel %vm448_vm7, %v445_v28, %v447_v27  ;;  %v450_v10 = vsel %vm448_vm7, %v447_v27, %v445_v28 }
  0xe6   : > { %v463_v32 = vmul.f32 %v1510_v21, %v450_v10  ;;  %927 = vmatprep.subr.bf16.mxu0 %v926_v29  ;;  %v462_v33 = vmul.f32 %v1517_v26, %v449_v31 }
  0xe7   : > { %929 = vmatpush1.bf16.msra.mxu0 %v928_v30 }
  0xe8   : > { %501 = vmatprep.subr.mxu0 %v463_v32 }
  0xeb   : > { %502 = vmatpush1.msra.mxu0 %v462_v33 }
  0xec   : > { %904 = vmatmul.mubr.msk.f32.vlgmr.msra.gmra.mrb[0].mxu0 %vm478_vm8, %v464_v9 }
  0xed   : > { %555 = vmatprep.mubr.f32.mxu0 %v1182_v2 }
  0xf0   : > { %905 = vmatmul.mubr.msk.f32.gmra.mrb[2].mxu0 %vm478_vm8, %v465_v34 }
  0xf5   : > { %v471_v39 = vpop.permute.xlu0 %470  ;;  %v476_v44 = vpop.permute.xlu1 %475 }
 0x1bf   : > { %v551_v40 = vpop.f32.mrb[0].mxu0 }
 0x1c0   : > { %v552_v41 = vadd.f32 %v551_v40, %v471_v39  ;;  %v553_v42 = vpop.f32.mrb[1].mxu0 }
 0x1c1   : > { %v554_v43 = vadd.f32 %v553_v42, %v471_v39 }
 0x1c2   : > { %vm562_vm9 = vcmp.gt.f32.partialorder %v552_v41, 0.0  ;;  %v566_v45 = vmul.f32 0.01, %v552_v41 }
 0x1c3   : > { %v557_v48 = vpop.f32.mrb[2].mxu0  ;;  %v567_v52 = vmul.f32 0.01, %v554_v43  ;;  %vm563_vm10 = vcmp.gt.f32.partialorder %v554_v43, 0.0 }
 0x1c4   : > { %v1532_v49 = vsel %vm562_vm9, %v552_v41, %v566_v45  ;;  %v558_v50 = vadd.f32 %v557_v48, %v476_v44  ;;  %v559_v51 = vpop.f32.mrb[3].mxu0 }
 0x1c5   : > { %v560_v2 = vadd.f32 %v559_v51, %v476_v44  ;;  %574 = vrot.lane.b32.xlu1 %v1532_v49, %s1177_s19  ;;  %v1538_v56 = vsel %vm563_vm10, %v554_v43, %v567_v52 }
 0x1c6   : > { %vm564_vm11 = vcmp.gt.f32.partialorder %v558_v50, 0.0  ;;  %v568_v53 = vmul.f32 0.01, %v558_v50 }
 0x1c7   : > { %vm565_vm12 = vcmp.gt.f32.partialorder %v560_v2, 0.0  ;;  %v569_v54 = vmul.f32 0.01, %v560_v2 }
 0x1c8   : > { %v1536_v55 = vsel %vm564_vm11, %v558_v50, %v568_v53 }
 0x1c9   : > { %v1540_v57 = vsel %vm565_vm12, %v560_v2, %v569_v54  ;;  %576 = vrot.lane.b32.xlu0 %v1536_v55, %s1177_s19  ;;  %590 = vrot.lane.b32.xlu1 %v1532_v49, %s1176_s29  ;;  %v948_v58 = vpack.c.bf16 %v1536_v55, %v1532_v49 }
 0x1ca   : > { %v946_v59 = vpack.c.bf16 %v1540_v57, %v1538_v56 }
 0x1cd   : > { %592 = vrot.lane.b32.xlu0 %v1536_v55, %s1176_s29  ;;  %606 = vrot.lane.b32.xlu1 %v1532_v49, %s1178_s27 }
 0x1d1   : > { %608 = vrot.lane.b32.xlu0 %v1536_v55, %s1178_s27  ;;  %622 = vrot.lane.b32.xlu1 %v1532_v49, %s1179_s10 }
 0x1d5   : > { %624 = vrot.lane.b32.xlu0 %v1536_v55, %s1179_s10  ;;  %638 = vrot.lane.b32.xlu1 %v1532_v49, %s1180_s11 }
 0x1d9   : > { %640 = vrot.lane.b32.xlu0 %v1536_v55, %s1180_s11  ;;  %654 = vrot.lane.b32.xlu1 %v1532_v49, %s1181_s20 }
 0x1dd   : > { %656 = vrot.lane.b32.xlu0 %v1536_v55, %s1181_s20  ;;  %670 = vrot.lane.b32.xlu1 %v1532_v49, %s1183_s8 }
 0x1e1   : > { %672 = vrot.lane.b32.xlu0 %v1536_v55, %s1183_s8  ;;  %578 = vrot.lane.b32.xlu1 %v1538_v56, %s1177_s19 }
 0x1e5   : > { %580 = vrot.lane.b32.xlu0 %v1540_v57, %s1177_s19  ;;  %594 = vrot.lane.b32.xlu1 %v1538_v56, %s1176_s29 }
 0x1e9   : > { %596 = vrot.lane.b32.xlu0 %v1540_v57, %s1176_s29  ;;  %610 = vrot.lane.b32.xlu1 %v1538_v56, %s1178_s27 }
 0x1ed   : > { %612 = vrot.lane.b32.xlu0 %v1540_v57, %s1178_s27  ;;  %626 = vrot.lane.b32.xlu1 %v1538_v56, %s1179_s10 }
 0x1f1   : > { %628 = vrot.lane.b32.xlu0 %v1540_v57, %s1179_s10  ;;  %686 = vrot.lane.b32.xlu1 %v1532_v49, %s1185_s15 }
 0x1f5   : > { %688 = vrot.lane.b32.xlu0 %v1536_v55, %s1185_s15  ;;  %642 = vrot.lane.b32.xlu1 %v1538_v56, %s1180_s11 }
 0x1f9   : > { %644 = vrot.lane.b32.xlu0 %v1540_v57, %s1180_s11  ;;  %658 = vrot.lane.b32.xlu1 %v1538_v56, %s1181_s20  ;;  %s903_s11 = sshll.u32 %s1358_s26, 3 }
 0x1fd   : > { %660 = vrot.lane.b32.xlu0 %v1540_v57, %s1181_s20  ;;  %674 = vrot.lane.b32.xlu1 %v1538_v56, %s1183_s8  ;;  %s913_s20 = sshll.u32 %s1243_s25, 7  ;;  %s1186_s25 = smov [#allocation7]  }
 0x1fe   : > { %s1750_s16 = scalar_lea.hbm %s1800_s6, %s913_s20  ;;  %s1104_s7 = sshll.u32 %s1186_s25, 4  ;;  %s1105_s7 = int_to_ptr.vmem [resolvable:$false] %s1104_s7 }
 0x1ff   : > { %s1106_s29 = scalar_lea.vmem %s1105_s7, 256 }
 0x201   : > { %676 = vrot.lane.b32.xlu0 %v1540_v57, %s1183_s8  ;;  %690 = vrot.lane.b32.xlu1 %v1538_v56, %s1185_s15  ;;  %s282_s8 = scalar_lea.vmem [#allocation7], %s903_s11 }
 0x205   : > { %692 = vrot.lane.b32.xlu0 %v1540_v57, %s1185_s15  ;;  %706 = vperm.xlu1 %1036, %v703_v62   ;;  %s813_s15 = sshll.u32 %s282_s8, 4  ;;  %s1752_s15 = int_to_ptr.vmem [resolvable:$true] %s813_s15 }
 0x206   : > { %s1100_s18 = scalar_lea.vmem %s1752_s15, 128  ;;  %p1107_p10 = scmp.lt.s32.totalorder %s1752_s15, %s1105_s7 }
 0x207   : > { %p1101_p4 = scmp.ne.s32.totalorder %s1752_s15, %s1100_s18  ;;  %p1108_p13 = scmp.lt.s32.totalorder %s1106_s29, %s1100_s18 }
 0x209   : > { %p1102_p6 = pnand %p1101_p4, %p1313_p12  ;;  %p1109_p3 = por %p1108_p13, %p1107_p10 }
 0x20b   : > { %p1103_p8 = pneg %p1102_p6 }
 0x20d   : > { %p1110_p7 = pnand %p1109_p3, %p1103_p8 }
 0x237   : > { %v575_v63 = vpop.permute.xlu1 %574 }
 0x23b   : > { %v577_v3 = vpop.permute.xlu0 %576  ;;  %v591_v4 = vpop.permute.xlu1 %590 }
 0x23f   : > { %v593_v12 = vpop.permute.xlu0 %592  ;;  %v607_v1 = vpop.permute.xlu1 %606 }
 0x243   : > { %v609_v0 = vpop.permute.xlu0 %608  ;;  %v623_v13 = vpop.permute.xlu1 %622 }
 0x247   : > { %v625_v14 = vpop.permute.xlu0 %624  ;;  %v1618_v19 = vpop.permute.xlu1 %638 }
 0x24b   : > { %v1620_v20 = vpop.permute.xlu0 %640  ;;  %v1622_v22 = vpop.permute.xlu1 %654 }
 0x24f   : > { %v1624_v23 = vpop.permute.xlu0 %656  ;;  %v1626_v24 = vpop.permute.xlu1 %670 }
 0x253   : > { %v1628_v25 = vpop.permute.xlu0 %672  ;;  %v579_v27 = vpop.permute.xlu1 %578 }
 0x254   : > { %v582_v28 = vsel %vm308_vm1, %v575_v63, %v579_v27  ;;  %v584_v29 = vsel %vm308_vm1, %v579_v27, %v575_v63 }
 0x255   : > { %v586_v33 = vmul.f32 %v584_v29, %v1425_v16  ;;  %v587_v34 = vmul.f32 %v582_v28, %v1428_v17 }
 0x257   : > { %v581_v30 = vpop.permute.xlu0 %580  ;;  %v595_v31 = vpop.permute.xlu1 %594 }
 0x258   : > { %v583_v10 = vsel %vm308_vm1, %v577_v3, %v581_v30  ;;  %v585_v32 = vsel %vm308_vm1, %v581_v30, %v577_v3  ;;  %v598_v40 = vsel %vm328_vm0, %v591_v4, %v595_v31  ;;  %v600_v41 = vsel %vm328_vm0, %v595_v31, %v591_v4 }
 0x259   : > { %v588_v9 = vmul.f32 %v585_v32, %v1425_v16  ;;  %v589_v39 = vmul.f32 %v583_v10, %v1428_v17  ;;  %v602_v50 = vmul.f32 %v600_v41, %v1422_v15  ;;  %v603_v17 = vmul.f32 %v598_v40, %v1431_v18 }
 0x25b   : > { %v597_v42 = vpop.permute.xlu0 %596  ;;  %v611_v43 = vpop.permute.xlu1 %610  ;;  %v930_v44 = vpack.c.bf16 %v589_v39, %v587_v34  ;;  %v932_v45 = vpack.c.bf16 %v588_v9, %v586_v33 }
 0x25c   : > { %v599_v48 = vsel %vm328_vm0, %v593_v12, %v597_v42  ;;  %v601_v16 = vsel %vm328_vm0, %v597_v42, %v593_v12  ;;  %v614_v2 = vsel %vm348_vm2, %v607_v1, %v611_v43  ;;  %v616_v53 = vsel %vm348_vm2, %v611_v43, %v607_v1 }
 0x25d   : > { %v604_v51 = vmul.f32 %v601_v16, %v1422_v15  ;;  %v605_v52 = vmul.f32 %v599_v48, %v1431_v18  ;;  %931 = vmatprep.subr.bf16.mxu1 %v930_v44  ;;  %v618_v18 = vmul.f32 %v616_v53, %v1448_v35  ;;  %v619_v4 = vmul.f32 %v614_v2, %v1451_v36 }
 0x25e   : > { %933 = vmatpush1.bf16.msra.mxu1 %v932_v45 }
 0x25f   : > { %v613_v54 = vpop.permute.xlu0 %612  ;;  %v627_v61 = vpop.permute.xlu1 %626  ;;  %v934_v62 = vpack.c.bf16 %v605_v52, %v603_v17  ;;  %v936_v63 = vpack.c.bf16 %v604_v51, %v602_v50 }
 0x260   : > { %v615_v3 = vsel %vm348_vm2, %v609_v0, %v613_v54  ;;  %v617_v15 = vsel %vm348_vm2, %v613_v54, %v609_v0  ;;  %v630_v1 = vsel %vm368_vm3, %v623_v13, %v627_v61  ;;  %v632_v28 = vsel %vm368_vm3, %v627_v61, %v623_v13 }
 0x261   : > { %v620_v12 = vmul.f32 %v617_v15, %v1448_v35  ;;  %v621_v27 = vmul.f32 %v615_v3, %v1451_v36  ;;  %935 = vmatprep.subr.bf16.mxu1 %v934_v62  ;;  %v634_v36 = vmul.f32 %v632_v28, %v1454_v37  ;;  %v635_v32 = vmul.f32 %v630_v1, %v1457_v38 }
 0x262   : > { %937 = vmatpush1.bf16.msra.mxu1 %v936_v63 }
 0x263   : > { %v629_v29 = vpop.permute.xlu0 %628  ;;  %v687_v30 = vpop.permute.xlu1 %686  ;;  %v938_v31 = vpack.c.bf16 %v621_v27, %v619_v4  ;;  %v940_v0 = vpack.c.bf16 %v620_v12, %v618_v18 }
 0x264   : > { %v631_v10 = vsel %vm368_vm3, %v625_v14, %v629_v29  ;;  %v633_v35 = vsel %vm368_vm3, %v629_v29, %v625_v14 }
 0x265   : > { %v636_v33 = vmul.f32 %v633_v35, %v1454_v37  ;;  %v637_v9 = vmul.f32 %v631_v10, %v1457_v38  ;;  %939 = vmatprep.subr.bf16.mxu1 %v938_v31 }
 0x266   : > { %941 = vmatpush1.bf16.msra.mxu1 %v940_v0 }
 0x267   : > { %v689_v13 = vpop.permute.xlu0 %688  ;;  %v643_v34 = vpop.permute.xlu1 %642  ;;  %v942_v39 = vpack.c.bf16 %v637_v9, %v635_v32  ;;  %v944_v40 = vpack.c.bf16 %v636_v33, %v634_v36 }
 0x268   : > { %v646_v41 = vsel %vm388_vm4, %v1618_v19, %v643_v34  ;;  %v648_v14 = vsel %vm388_vm4, %v643_v34, %v1618_v19 }
 0x269   : > { %943 = vmatprep.subr.bf16.mxu1 %v942_v39  ;;  %v650_v44 = vmul.f32 %v646_v41, %v1469_v46  ;;  %v651_v45 = vmul.f32 %v648_v14, %v1472_v47 }
 0x26a   : > { %945 = vmatpush1.bf16.msra.mxu1 %v944_v40 }
 0x26b   : > { %v645_v42 = vpop.permute.xlu0 %644  ;;  %947 = vmatprep.subr.bf16.mxu1 %v946_v59  ;;  %v659_v37 = vpop.permute.xlu1 %658 }
 0x26c   : > { %v647_v38 = vsel %vm388_vm4, %v1620_v20, %v645_v42  ;;  %v649_v43 = vsel %vm388_vm4, %v645_v42, %v1620_v20  ;;  %v662_v56 = vsel %vm408_vm5, %v1622_v22, %v659_v37  ;;  %v664_v57 = vsel %vm408_vm5, %v659_v37, %v1622_v22 }
 0x26d   : > { %v652_v19 = vmul.f32 %v647_v38, %v1469_v46  ;;  %v653_v48 = vmul.f32 %v649_v43, %v1472_v47  ;;  %v666_v17 = vmul.f32 %v662_v56, %v1488_v5  ;;  %v667_v22 = vmul.f32 %v664_v57, %v1491_v6 }
 0x26e   : > { %949 = vmatpush1.bf16.msra.mxu1 %v948_v58 }
 0x26f   : > { %v661_v59 = vpop.permute.xlu0 %660  ;;  %v675_v20 = vpop.permute.xlu1 %674  ;;  %v950_v16 = vpack.c.bf16 %v653_v48, %v651_v45  ;;  %v952_v50 = vpack.c.bf16 %v652_v19, %v650_v44 }
 0x270   : > { %v663_v46 = vsel %vm408_vm5, %v1624_v23, %v661_v59  ;;  %v665_v47 = vsel %vm408_vm5, %v661_v59, %v1624_v23  ;;  %v678_v55 = vsel %vm428_vm6, %v1626_v24, %v675_v20  ;;  %v680_v58 = vsel %vm428_vm6, %v675_v20, %v1626_v24 }
 0x271   : > { %v668_v51 = vmul.f32 %v663_v46, %v1488_v5  ;;  %v669_v49 = vmul.f32 %v665_v47, %v1491_v6  ;;  %951 = vmatprep.subr.bf16.mxu1 %v950_v16  ;;  %v682_v54 = vmul.f32 %v678_v55, %v1495_v7  ;;  %v683_v61 = vmul.f32 %v680_v58, %v1498_v11 }
 0x272   : > { %953 = vmatpush1.bf16.msra.mxu1 %v952_v50 }
 0x273   : > { %v677_v52 = vpop.permute.xlu0 %676  ;;  %v691_v23 = vpop.permute.xlu1 %690  ;;  %v954_v2 = vpack.c.bf16 %v669_v49, %v667_v22  ;;  %v956_v53 = vpack.c.bf16 %v668_v51, %v666_v17 }
 0x274   : > { %v679_v5 = vsel %vm428_vm6, %v1628_v25, %v677_v52  ;;  %v681_v6 = vsel %vm428_vm6, %v677_v52, %v1628_v25  ;;  %v694_v63 = vsel %vm448_vm7, %v687_v30, %v691_v23  ;;  %v696_v3 = vsel %vm448_vm7, %v691_v23, %v687_v30 }
 0x275   : > { %v684_v62 = vmul.f32 %v679_v5, %v1495_v7  ;;  %v685_v24 = vmul.f32 %v681_v6, %v1498_v11  ;;  %955 = vmatprep.subr.bf16.mxu1 %v954_v2  ;;  %v698_v7 = vmul.f32 %v694_v63, %v1517_v26  ;;  %v699_v11 = vmul.f32 %v696_v3, %v1510_v21 }
 0x276   : > { %957 = vmatpush1.bf16.msra.mxu1 %v956_v53 }
 0x277   : > { %v693_v15 = vpop.permute.xlu0 %692  ;;  %v958_v18 = vpack.c.bf16 %v685_v24, %v683_v61  ;;  %v960_v4 = vpack.c.bf16 %v684_v62, %v682_v54 }
 0x278   : > { %v695_v25 = vsel %vm448_vm7, %v689_v13, %v693_v15  ;;  %v697_v12 = vsel %vm448_vm7, %v693_v15, %v689_v13 }
 0x279   : > { %v700_v27 = vmul.f32 %v695_v25, %v1517_v26  ;;  %v701_v1 = vmul.f32 %v697_v12, %v1510_v21  ;;  %959 = vmatprep.subr.bf16.mxu1 %v958_v18 }
 0x27a   : > { %961 = vmatpush1.bf16.msra.mxu1 %v960_v4 }
 0x27b   : > { %v962_v28 = vpack.c.bf16 %v701_v1, %v699_v11  ;;  %v964_v29 = vpack.c.bf16 %v700_v27, %v698_v7 }
 0x27d   : > { %963 = vmatprep.subr.bf16.mxu1 %v962_v28 }
 0x27e   : > { %965 = vmatpush1.bf16.msra.mxu1 %v964_v29 }
 0x281   : > { %779 = vmatmul.mubr.f32.vlgmr.msra.gmra.mrb[0].mxu1 %v1605_v60 }
 0x284   : > { %v707_v8 = vpop.permute.xlu1 %706 }
 0x354   : > { %v780_v30 = vpop.f32.mrb[0].mxu1 }
 0x355   : > { %v781_v31 = vadd.f32 %v780_v30, %v707_v8  ;;  %v782_v0 = vpop.f32.mrb[1].mxu1 }
 0x356   : > { %v783_v10 = vadd.f32 %v782_v0, %v707_v8 }
 0x357   : > { %vm785_vm14 = vcmp.gt.f32.partialorder %v781_v31, 0.0  ;;  %v787_v35 = vmul.f32 0.01, %v781_v31 }
 0x358   : > { %vm786_vm15 = vcmp.gt.f32.partialorder %v783_v10, 0.0  ;;  %v788_v21 = vmul.f32 0.01, %v783_v10 }
 0x359   : > { %v789_v26 = vsel %vm785_vm14, %v781_v31, %v787_v35 }
 0x35a   : > { %1038 = vtanh.f32 %v789_v26  ;;  %v790_v36 = vsel %vm786_vm15, %v783_v10, %v788_v21 }
 0x35b   : > { %1040 = vtanh.f32 %v790_v36 }
 0x364   : > { %v1039_v60 = vpop.eup %1038 }
 0x365   : > { %v1041_v32 = vpop.eup %1040 }
 0x366   : > { %v795_v33 = vcombine.low %v1039_v60, %v1041_v32 }
 0x368   : > { %797 = vst [vmem:[%s282_s8] sm:$0x77] %v795_v33 }
 0x369   : > { %1113 = shalt.err (!%p1110_p7)
}
 0x36a   : > { %s1114_s26 = scalar_lea.hbm %s1750_s16, 128  ;;  %s1118_s10 = scalar_lea.hbm %s1800_s6, 256 }
 0x36b   : > { %p1115_p9 = scmp.ne.s32.totalorder %s1750_s16, %s1114_s26  ;;  %p1119_p0 = scmp.lt.u32.totalorder %s1750_s16, %s1800_s6 }
 0x36c   : > { %p1120_p1 = scmp.lt.u32.totalorder %s1118_s10, %s1114_s26  ;;  %p1122_p4 = scmp.lt.u32.totalorder %s1114_s26, %s1750_s16 }
 0x36d   : > { %p1116_p2 = pnand %p1115_p9, %p1313_p12 }
 0x36e   : > { %p1121_p11 = por %p1120_p1, %p1119_p0 }
 0x36f   : > { %p1117_p5 = pneg %p1116_p2 }
 0x370   : > { %p1123_p6 = por %p1122_p4, %p1121_p11 }
 0x372   : > { %p1124_p8 = pnand %p1123_p6, %p1117_p5 }
 0x374   : > { %1127 = shalt.err (!%p1124_p8)
}
 0x375   : > { %972 = dma.vmem_to_hbm [thread:$0]  (%p1313_p12), %s1752_s15, 128, %s1750_s16, %s799_s17  }
 0x376 PF: > { %s825_s8 = sand.u32 1, %s1158_s21   ;;  %p1815_p10 = scmp.ne.s32.totalorder %s1805_s28, 0 }
 0x377   : > { %p1816_p13 = scmp.ge.s32.totalorder %s1170_s24, 2  ;;  %s826_s30 = scalar_lea.sflag [#allocation4], %s825_s8 }
 0x379   : > { %p983_p3 = pnand %p1816_p13, %p1815_p10 }
 0x37b   : > { %1153 = dma.done.wait (!%p983_p3), %s826_s30, 128  }
 0x37c   : > { %1155 = vsyncadd (!%p983_p3), %s826_s30, 4294967168  ;;  %p20_p7 = scmp.ge.s32.totalorder %s1278_s9, 4   ;;  %s1817_s21 = smov %s1162_s22 }
 0x37d   : > { %s1818_s22 = smov %s1166_s23  ;;  %s1819_s23 = smov %s1309_s13 }
 0x37e   : > { %s1820_s24 = smov %s1278_s9  ;;  %22 = sbr.rel (!%p20_p7) target bundleno = 6 (0x6), region = 100 }
 0x385   :  { %831 = vsyncpa [#allocation3], 1 }
 0x386   :  { %833 = vsyncpa [#allocation3 + $0x1], 1 }
 0x387   :  { %834 = vsyncpa [#allocation6], 1 }
 0x388   :  { %835 = vsyncpa [#allocation4], 1 }
 0x389   :  { %837 = vsyncpa [#allocation4 + $0x1], 1 }

</bundles_post_ra>
